<compile_context>
chip_gen: v6e
topology: v6e:2x2x1
jax: 0.10.0
libtpu: 0.0.40
codegen_flags: <defaults>
</compile_context>

<pallas_src>
import functools
import math

import jax
import jax.numpy as jnp
from jax.experimental import pallas as pl
from jax.experimental.pallas import tpu as pltpu


def _round_up(n, m):
    return ((n + m - 1) // m) * m


def _red_mi_kernel(x_ref, emb_ref, w1x_ref, w1e_ref, b1_ref, w2_ref, b2_ref,
                   w3_ref, b3_ref, o_ref):
    # Layer 1: split-W1 formulation avoids the in-kernel lane-axis concat.
    # Dots accumulate in f32; bias add / ReLU in f32 (safe on v5e's non-bf16 VPU too).
    h = (jnp.dot(x_ref[...], w1x_ref[...], preferred_element_type=jnp.float32)
         + jnp.dot(emb_ref[...], w1e_ref[...], preferred_element_type=jnp.float32)
         + b1_ref[...])
    h = jnp.maximum(h, 0.0)

    # Layer 2: Linear(h1, h2) + ReLU
    h = jnp.dot(h.astype(w2_ref.dtype), w2_ref[...],
                preferred_element_type=jnp.float32) + b2_ref[...]
    h = jnp.maximum(h, 0.0)

    # Layer 3: Linear(h2, out_pad)  (columns zero-padded to a lane-dense width)
    out = jnp.dot(h.astype(w3_ref.dtype), w3_ref[...],
                  preferred_element_type=jnp.float32) + b3_ref[...]
    o_ref[...] = out.astype(o_ref.dtype)


@functools.partial(jax.jit, static_argnames=("block_b", "compute_dtype"))
def red_mi_forward(x, embedding, params, *, block_b=512, compute_dtype=jnp.bfloat16):
    """x: (B, input_dim), embedding: (B, bed). Returns (B, output_dim) float32."""
    w1, b1, w2, b2, w3, b3 = params
    B, input_dim = x.shape
    bed = embedding.shape[1]
    h1 = w1.shape[1]
    h2 = w2.shape[1]
    out_dim = w3.shape[1]

    # --- Split W1 so the kernel never concatenates along the lane axis. ---
    w1x = w1[:input_dim, :]
    w1e = w1[input_dim:, :]

    # --- Lane-dense output: pad last layer's columns to a multiple of 128. ---
    out_pad = _round_up(max(out_dim, 1), 128)
    w3p = jnp.zeros((h2, out_pad), w3.dtype).at[:, :out_dim].set(w3)
    b3p = jnp.zeros((1, out_pad), jnp.float32).at[:, :out_dim].set(b3.astype(jnp.float32))

    # --- Batch tiling: block is a multiple of 8 (sublane rule); pad B up to a multiple. ---
    tb = min(block_b, _round_up(B, 8))
    B_pad = _round_up(B, tb)
    if B_pad != B:
        x = jnp.pad(x, ((0, B_pad - B), (0, 0)))
        embedding = jnp.pad(embedding, ((0, B_pad - B), (0, 0)))
    grid = (B_pad // tb,)

    # --- bf16 (or f32) operands for the MXU; biases stay f32. ---
    xc = x.astype(compute_dtype)
    ec = embedding.astype(compute_dtype)
    w1xc = w1x.astype(compute_dtype)
    w1ec = w1e.astype(compute_dtype)
    w2c = w2.astype(compute_dtype)
    w3c = w3p.astype(compute_dtype)
    b1f = b1.astype(jnp.float32)
    b2f = b2.astype(jnp.float32)

    cbytes = jnp.dtype(compute_dtype).itemsize
    d_in = input_dim + bed
    cost = pl.CostEstimate(
        flops=2 * B_pad * (d_in * h1 + h1 * h2 + h2 * out_pad),
        transcendentals=0,
        bytes_accessed=(B_pad * (input_dim + bed) * cbytes          # streamed inputs
                        + B_pad * out_pad * 4                        # streamed output
                        + (d_in * h1 + h1 * h2 + h2 * out_pad) * cbytes
                        + (h1 + h2 + out_pad) * 4),                  # resident weights/biases
    )

    resident = lambda shape: pl.BlockSpec(shape, lambda i: tuple(0 for _ in shape))

    out = pl.pallas_call(
        _red_mi_kernel,
        out_shape=jax.ShapeDtypeStruct((B_pad, out_pad), jnp.float32),
        grid=grid,
        in_specs=[
            pl.BlockSpec((tb, input_dim), lambda i: (i, 0)),   # x      (streamed over batch)
            pl.BlockSpec((tb, bed), lambda i: (i, 0)),         # emb    (streamed over batch)
            resident((input_dim, h1)),                         # w1_x   (VMEM-resident)
            resident((bed, h1)),                               # w1_e
            resident((1, h1)),                                 # b1
            resident((h1, h2)),                                # w2
            resident((1, h2)),                                 # b2
            resident((h2, out_pad)),                           # w3 (padded)
            resident((1, out_pad)),                            # b3 (padded)
        ],
        out_specs=pl.BlockSpec((tb, out_pad), lambda i: (i, 0)),
        compiler_params=pltpu.CompilerParams(
            dimension_semantics=("parallel",)),                # shard batch axis across TCs (v7x)
        cost_estimate=cost,
    )(xc, ec, w1xc, w1ec, b1f, w2c, b2f, w3c, b3p)

    return out[:B, :out_dim]
    # TODO(synk): for very large B a fully transposed [features, B_tile] layout would make
    # the *input* streams lane-dense too; kept row-major here for clarity.


def xavier_uniform(key, fan_in, fan_out, dtype=jnp.float32):
    # Matches torch.nn.init.xavier_uniform_ (gain=1): U(-a, a), a = sqrt(6/(fan_in+fan_out)).
    a = math.sqrt(6.0 / (fan_in + fan_out))
    return jax.random.uniform(key, (fan_in, fan_out), dtype=dtype, minval=-a, maxval=a)


def init_params(key, input_dim, output_dim, bayesian_embedding_dim=4, h1=16, h2=32):
    d_in = input_dim + bayesian_embedding_dim
    k1, k2, k3 = jax.random.split(key, 3)
    w1 = xavier_uniform(k1, d_in, h1)
    b1 = jnp.zeros((1, h1), jnp.float32)
    w2 = xavier_uniform(k2, h1, h2)
    b2 = jnp.zeros((1, h2), jnp.float32)
    w3 = xavier_uniform(k3, h2, output_dim)
    b3 = jnp.zeros((1, output_dim), jnp.float32)
    return (w1, b1, w2, b2, w3, b3)


def red_mi_reference(x, embedding, params):
    w1, b1, w2, b2, w3, b3 = params
    ins = jnp.concatenate([x, embedding], axis=1)
    h = jnp.maximum(ins @ w1 + b1, 0.0)
    h = jnp.maximum(h @ w2 + b2, 0.0)
    return h @ w3 + b3


if __name__ == "__main__":
    batch = 2
    input_dim = 8
    output_dim = 4
    bed = 4

    key = jax.random.PRNGKey(0)
    kx, ke, kp = jax.random.split(key, 3)

    x = jax.random.normal(kx, (batch, input_dim), jnp.float32)
    emb = jax.random.normal(ke, (batch, bed), jnp.float32)
    params = init_params(kp, input_dim, output_dim, bayesian_embedding_dim=bed, h1=16, h2=32)

    ref = red_mi_reference(x, emb, params)

    # Full-precision path: must match the reference tightly.
    out_f32 = jax.block_until_ready(
        red_mi_forward(x, emb, params, compute_dtype=jnp.float32))
    assert out_f32.shape == (batch, output_dim), out_f32.shape
    assert jnp.allclose(out_f32, ref, atol=1e-5, rtol=1e-5), (out_f32, ref)

    # Default bf16-MXU path: looser tolerance (bf16 operands, f32 accumulation).
    out_bf16 = jax.block_until_ready(red_mi_forward(x, emb, params))
    assert out_bf16.shape == (batch, output_dim), out_bf16.shape
    assert jnp.allclose(out_bf16, ref, atol=2e-2, rtol=2e-2), (out_bf16, ref)

    print("KERNEL_OK")
</pallas_src>

<mosaic_0001>
module attributes {stable_mosaic.version = 11 : i64} {
  func.func @_red_mi_kernel(%arg0: i32, %arg1: memref<8x8xf32, #tpu.memory_space<vmem>>, %arg2: memref<8x4xf32, #tpu.memory_space<vmem>>, %arg3: memref<8x16xf32, #tpu.memory_space<vmem>>, %arg4: memref<4x16xf32, #tpu.memory_space<vmem>>, %arg5: memref<1x16xf32, #tpu.memory_space<vmem>>, %arg6: memref<16x32xf32, #tpu.memory_space<vmem>>, %arg7: memref<1x32xf32, #tpu.memory_space<vmem>>, %arg8: memref<32x128xf32, #tpu.memory_space<vmem>>, %arg9: memref<1x128xf32, #tpu.memory_space<vmem>>, %arg10: memref<8x128xf32, #tpu.memory_space<vmem>>) attributes {dimension_semantics = [#tpu.dimension_semantics<parallel>], iteration_bounds = array<i64: 1>, scalar_prefetch = 0 : i64, scratch_operands = 0 : i64, tpu.core_type = #tpu.core_type<tc>, window_params = [{transform_indices = @transform_0, window_bounds = array<i64: 8, 8>}, {transform_indices = @transform_1, window_bounds = array<i64: 8, 4>}, {pipeline_mode = #tpu.pipeline_mode<synchronous>, transform_indices = @transform_2, window_bounds = array<i64: 8, 16>}, {pipeline_mode = #tpu.pipeline_mode<synchronous>, transform_indices = @transform_3, window_bounds = array<i64: 4, 16>}, {pipeline_mode = #tpu.pipeline_mode<synchronous>, transform_indices = @transform_4, window_bounds = array<i64: 1, 16>}, {pipeline_mode = #tpu.pipeline_mode<synchronous>, transform_indices = @transform_5, window_bounds = array<i64: 16, 32>}, {pipeline_mode = #tpu.pipeline_mode<synchronous>, transform_indices = @transform_6, window_bounds = array<i64: 1, 32>}, {pipeline_mode = #tpu.pipeline_mode<synchronous>, transform_indices = @transform_7, window_bounds = array<i64: 32, 128>}, {pipeline_mode = #tpu.pipeline_mode<synchronous>, transform_indices = @transform_8, window_bounds = array<i64: 1, 128>}, {transform_indices = @transform_9, window_bounds = array<i64: 8, 128>}]} {
    %c0 = arith.constant 0 : index
    %c0_0 = arith.constant 0 : index
    %0 = vector.load %arg1[%c0, %c0_0] : memref<8x8xf32, #tpu.memory_space<vmem>>, vector<8x8xf32>
    %c0_1 = arith.constant 0 : index
    %c0_2 = arith.constant 0 : index
    %1 = vector.load %arg3[%c0_1, %c0_2] : memref<8x16xf32, #tpu.memory_space<vmem>>, vector<8x16xf32>
    %cst = arith.constant dense<0.000000e+00> : vector<8x16xf32>
    %2 = tpu.matmul %0, %1, %cst {dimension_numbers = #tpu.dot_dimension_numbers<[1], [0], [0], [1], [0, 0, 1, 1], [], []>} : vector<8x8xf32>, vector<8x16xf32>, vector<8x16xf32> -> vector<8x16xf32>
    %c0_3 = arith.constant 0 : index
    %c0_4 = arith.constant 0 : index
    %3 = vector.load %arg2[%c0_3, %c0_4] : memref<8x4xf32, #tpu.memory_space<vmem>>, vector<8x4xf32>
    %c0_5 = arith.constant 0 : index
    %c0_6 = arith.constant 0 : index
    %4 = vector.load %arg4[%c0_5, %c0_6] : memref<4x16xf32, #tpu.memory_space<vmem>>, vector<4x16xf32>
    %cst_7 = arith.constant dense<0.000000e+00> : vector<8x16xf32>
    %5 = tpu.matmul %3, %4, %cst_7 {dimension_numbers = #tpu.dot_dimension_numbers<[1], [0], [0], [1], [0, 0, 1, 1], [], []>} : vector<8x4xf32>, vector<4x16xf32>, vector<8x16xf32> -> vector<8x16xf32>
    %6 = arith.addf %2, %5 : vector<8x16xf32>
    %c0_8 = arith.constant 0 : index
    %c0_9 = arith.constant 0 : index
    %7 = vector.load %arg5[%c0_8, %c0_9] : memref<1x16xf32, #tpu.memory_space<vmem>>, vector<1x16xf32>
    %8 = vector.broadcast %7 : vector<1x16xf32> to vector<8x16xf32>
    %9 = arith.addf %6, %8 : vector<8x16xf32>
    %cst_10 = arith.constant 0.000000e+00 : f32
    %10 = vector.broadcast %cst_10 : f32 to vector<8x16xf32>
    %11 = arith.maximumf %9, %10 : vector<8x16xf32>
    %c0_11 = arith.constant 0 : index
    %c0_12 = arith.constant 0 : index
    %12 = vector.load %arg6[%c0_11, %c0_12] : memref<16x32xf32, #tpu.memory_space<vmem>>, vector<16x32xf32>
    %cst_13 = arith.constant dense<0.000000e+00> : vector<8x32xf32>
    %13 = tpu.matmul %11, %12, %cst_13 {dimension_numbers = #tpu.dot_dimension_numbers<[1], [0], [0], [1], [0, 0, 1, 1], [], []>} : vector<8x16xf32>, vector<16x32xf32>, vector<8x32xf32> -> vector<8x32xf32>
    %c0_14 = arith.constant 0 : index
    %c0_15 = arith.constant 0 : index
    %14 = vector.load %arg7[%c0_14, %c0_15] : memref<1x32xf32, #tpu.memory_space<vmem>>, vector<1x32xf32>
    %15 = vector.broadcast %14 : vector<1x32xf32> to vector<8x32xf32>
    %16 = arith.addf %13, %15 : vector<8x32xf32>
    %cst_16 = arith.constant 0.000000e+00 : f32
    %17 = vector.broadcast %cst_16 : f32 to vector<8x32xf32>
    %18 = arith.maximumf %16, %17 : vector<8x32xf32>
    %c0_17 = arith.constant 0 : index
    %c0_18 = arith.constant 0 : index
    %19 = vector.load %arg8[%c0_17, %c0_18] : memref<32x128xf32, #tpu.memory_space<vmem>>, vector<32x128xf32>
    %cst_19 = arith.constant dense<0.000000e+00> : vector<8x128xf32>
    %20 = tpu.matmul %18, %19, %cst_19 {dimension_numbers = #tpu.dot_dimension_numbers<[1], [0], [0], [1], [0, 0, 1, 1], [], []>} : vector<8x32xf32>, vector<32x128xf32>, vector<8x128xf32> -> vector<8x128xf32>
    %c0_20 = arith.constant 0 : index
    %c0_21 = arith.constant 0 : index
    %21 = vector.load %arg9[%c0_20, %c0_21] : memref<1x128xf32, #tpu.memory_space<vmem>>, vector<1x128xf32>
    %22 = vector.broadcast %21 : vector<1x128xf32> to vector<8x128xf32>
    %23 = arith.addf %20, %22 : vector<8x128xf32>
    %c0_22 = arith.constant 0 : index
    %c0_23 = arith.constant 0 : index
    %24 = vector.load %arg10[%c0_22, %c0_23] : memref<8x128xf32, #tpu.memory_space<vmem>>, vector<8x128xf32>
    tpu.vector_store %arg10[%c0_22, %c0_23], %23 {strides = array<i32>} : memref<8x128xf32, #tpu.memory_space<vmem>>, vector<8x128xf32>,
    return
  }
  func.func @transform_0(%arg0: i32) -> (i32, i32) {
    %c0_i32 = arith.constant 0 : i32
    %c0_i32_0 = arith.constant 0 : i32
    return %arg0, %c0_i32 : i32, i32
  }
  func.func @transform_1(%arg0: i32) -> (i32, i32) {
    %c0_i32 = arith.constant 0 : i32
    %c0_i32_0 = arith.constant 0 : i32
    return %arg0, %c0_i32 : i32, i32
  }
  func.func @transform_2(%arg0: i32) -> (i32, i32) {
    %c0_i32 = arith.constant 0 : i32
    %c0_i32_0 = arith.constant 0 : i32
    %c0_i32_1 = arith.constant 0 : i32
    return %c0_i32, %c0_i32_0 : i32, i32
  }
  func.func @transform_3(%arg0: i32) -> (i32, i32) {
    %c0_i32 = arith.constant 0 : i32
    %c0_i32_0 = arith.constant 0 : i32
    %c0_i32_1 = arith.constant 0 : i32
    return %c0_i32, %c0_i32_0 : i32, i32
  }
  func.func @transform_4(%arg0: i32) -> (i32, i32) {
    %c0_i32 = arith.constant 0 : i32
    %c0_i32_0 = arith.constant 0 : i32
    %c0_i32_1 = arith.constant 0 : i32
    return %c0_i32, %c0_i32_0 : i32, i32
  }
  func.func @transform_5(%arg0: i32) -> (i32, i32) {
    %c0_i32 = arith.constant 0 : i32
    %c0_i32_0 = arith.constant 0 : i32
    %c0_i32_1 = arith.constant 0 : i32
    return %c0_i32, %c0_i32_0 : i32, i32
  }
  func.func @transform_6(%arg0: i32) -> (i32, i32) {
    %c0_i32 = arith.constant 0 : i32
    %c0_i32_0 = arith.constant 0 : i32
    %c0_i32_1 = arith.constant 0 : i32
    return %c0_i32, %c0_i32_0 : i32, i32
  }
  func.func @transform_7(%arg0: i32) -> (i32, i32) {
    %c0_i32 = arith.constant 0 : i32
    %c0_i32_0 = arith.constant 0 : i32
    %c0_i32_1 = arith.constant 0 : i32
    return %c0_i32, %c0_i32_0 : i32, i32
  }
  func.func @transform_8(%arg0: i32) -> (i32, i32) {
    %c0_i32 = arith.constant 0 : i32
    %c0_i32_0 = arith.constant 0 : i32
    %c0_i32_1 = arith.constant 0 : i32
    return %c0_i32, %c0_i32_0 : i32, i32
  }
  func.func @transform_9(%arg0: i32) -> (i32, i32) {
    %c0_i32 = arith.constant 0 : i32
    %c0_i32_0 = arith.constant 0 : i32
    return %arg0, %c0_i32 : i32, i32
  }
}

</mosaic_0001>

<bundles_post_ra>
// kernel: red_mi_forward.1
= control target key start
LH: loop header
LB: loop body
LE: loop exit
PB: predicated region body
PF: predicated region fallthrough
CT: control target
= control target key end

     0   :  { %vm40_vm0 = vcmask 1043456   ;;  %v421_v0 = vmov 0.0   ;;  %vm36_vm1 = vcmask 31744   ;;  %vm114_vm2 = vcmask 64512   ;;  %s515_s3 = inlined_call_operand.vmem [shape: f32[4,16], index: 3, kind: input, shape index: {}]   ;;  %s516_s2 = inlined_call_operand.vmem [shape: f32[8,16], index: 2, kind: input, shape index: {}]   ;;  %s517_s1 = inlined_call_operand.vmem [shape: f32[8,4], index: 1, kind: input, shape index: {}]   ;;  %s518_s0 = inlined_call_operand.vmem [shape: f32[8,8], index: 0, kind: input, shape index: {}]   ;;  %s519_s5 = inlined_call_operand.vmem [shape: f32[16,32], index: 5, kind: input, shape index: {}]   ;;  %s520_s7 = inlined_call_operand.vmem [shape: f32[32,128], index: 7, kind: input, shape index: {}]   ;;  %s521_s4 = inlined_call_operand.vmem [shape: f32[1,16], index: 4, kind: input, shape index: {}]   ;;  %s522_s6 = inlined_call_operand.vmem [shape: f32[1,32], index: 6, kind: input, shape index: {}]   ;;  %s523_s8 = inlined_call_operand.vmem [shape: f32[1,128], index: 8, kind: input, shape index: {}]   ;;  %s524_s9 = inlined_call_operand.vmem [shape: f32[8,128], index: 9, kind: output, shape index: {}]  }
   0x1   :  { %391 = vmatprep.subr.mxu0 %v421_v0  ;;  %396 = vmatprep.subr.mxu1 %v421_v0  ;;  %v35_v1 = vld [vmem:[%s515_s3] sm:$0xf]  ;;  %vm422_vm3 = vmmov 0   ;;  %v198_v5 = vld [vmem:[%s519_s5 + $0x8] sm:$0xff]  ;;  %v284_v7 = vld [vmem:[%s520_s7 + $0x18] sm:$0xff]  ;;  %vm206_vm4 = vcmask 130048  }
   0x2   :  { %v33_v2 = vld [vmem:[%s516_s2] sm:$0xff]  ;;  %392 = vmatpush3.msk.msra.mxu0 %vm40_vm0, %v35_v1  ;;  %393 = vmatprep.mubr.msk.f32.mxu0 %vm422_vm3, %v421_v0  ;;  %v283_v16 = vld [vmem:[%s520_s7 + $0x10] sm:$0xff]  ;;  %v282_v17 = vld [vmem:[%s520_s7 + $0x8] sm:$0xff]  ;;  %vm292_vm5 = vcmask 261120  }
   0x3   :  { %v34_v3 = vld [vmem:[%s517_s1] sm:$0xff]  ;;  %397 = vmatpush3.msra.mxu1 %v33_v2  ;;  %398 = vmatprep.mubr.msk.f32.mxu1 %vm422_vm3, %v421_v0 }
   0x4   :  { %v32_v4 = vld [vmem:[%s518_s0] sm:$0xff]  ;;  %394 = vmatmul.mubr.msk.f32.vlgmr.msra.gmra.mxu0 %vm36_vm1, %v34_v3  ;;  %401 = vmatprep.subr.mxu0 %v421_v0 }
   0x5   :  { %399 = vmatmul.mubr.msk.f32.vlgmr.msra.gmra.mxu1 %vm114_vm2, %v32_v4  ;;  %405 = vmatprep.mubr.msk.f32.mxu0 %vm422_vm3, %v421_v0  ;;  %v197_v6 = vld [vmem:[%s519_s5] sm:$0xff] }
   0x6   :  { %408 = vmatprep.subr.mxu1 %v421_v0  ;;  %416 = vmatprep.mubr.msk.f32.mxu1 %vm422_vm3, %v421_v0  ;;  %v374_v10 = vld [vmem:[%s521_s4] ss:$0 sm:$0xff] }
   0x7   :  { %402 = vmatpush3.msra.mxu0 %v198_v5  ;;  %409 = vmatpush3.msra.mxu1 %v284_v7  ;;  %v281_v18 = vld [vmem:[%s520_s7] sm:$0xff] }
   0x8   :  { %403 = vmatprep.subr.mxu0 %v421_v0  ;;  %410 = vmatprep.subr.mxu1 %v421_v0  ;;  %v375_v19 = vld [vmem:[%s522_s6] ss:$0 sm:$0xff] }
   0x9   :  { %404 = vmatpush3.msra.mxu0 %v197_v6  ;;  %411 = vmatpush3.msra.mxu1 %v283_v16  ;;  %v377_v24 = vld [vmem:[%s523_s8] ss:$0 sm:$0xff] }
   0xa   :  { %412 = vmatprep.subr.mxu1 %v421_v0 }
   0xb   :  { %413 = vmatpush3.msra.mxu1 %v282_v17 }
   0xc   :  { %414 = vmatprep.subr.mxu1 %v421_v0 }
   0xd   :  { %415 = vmatpush3.msra.mxu1 %v281_v18 }
  0xc4   :  { %v110_v8 = vpop.f32.mrf.mxu0 }
  0xc5   :  { %v184_v9 = vpop.f32.mrf.mxu1 }
  0xc6   :  { %v185_v11 = vadd.f32 %v184_v9, %v110_v8  ;;  %v395_v12 = vpop.f32.mrf.mxu0 }
  0xc7   :  { %v400_v13 = vpop.f32.mrf.mxu1 }
  0xc8   :  { %v195_v14 = vadd.f32 %v374_v10, %v185_v11 }
  0xca   :  { %v196_v15 = vmax.f32 %v195_v14, 0.0 }
  0xcc   :  { %406 = vmatmul.mubr.msk.f32.vlgmr.msra.gmra.mxu0 %vm206_vm4, %v196_v15 }
 0x18c   :  { %v276_v20 = vpop.f32.mrf.mxu0 }
 0x18d   :  { %v277_v21 = vadd.f32 %v375_v19, %v276_v20 }
 0x18e   :  { %v407_v22 = vpop.f32.mrf.mxu0 }
 0x18f   :  { %v280_v23 = vmax.f32 %v277_v21, 0.0 }
 0x191   :  { %417 = vmatmul.mubr.msk.f32.vlgmr.msra.gmra.mxu1 %vm292_vm5, %v280_v23 }
 0x251   :  { %v362_v25 = vpop.f32.mrf.mxu1 }
 0x252   :  { %v363_v26 = vadd.f32 %v377_v24, %v362_v25 }
 0x253   :  { %v418_v27 = vpop.f32.mrf.mxu1 }
 0x254   :  { %366 = vst [vmem:[%s524_s9] sm:$0xff] %v363_v26 }

</bundles_post_ra>
